<compile_context>
chip_gen: v5e
topology: v5e:2x2
jax: 0.10.0
libtpu: 0.0.40
codegen_flags: <defaults>
</compile_context>

<pallas_src>
import functools

import jax
import jax.numpy as jnp
from jax.experimental import pallas as pl
from jax.experimental.pallas import tpu as pltpu


def _round_up(n, m):
    return ((n + m - 1) // m) * m


# ----------------------------------------------------------------------------
# one-time hardware / capability probes
# ----------------------------------------------------------------------------
_HW_INFO = None


def _tpu_hw_info():
    """(vmem_capacity_bytes, tensorcores_per_device) with safe fallbacks."""
    global _HW_INFO
    if _HW_INFO is not None:
        return _HW_INFO
    vmem_cap = 64 << 20          # conservative default (v7x per-TC VMEM)
    n_cores = 1
    try:
        info = pltpu.get_tpu_info()
        for attr in ("vmem_capacity_bytes", "vmem_bytes", "vmem_size_bytes"):
            v = getattr(info, attr, None)
            if v:
                vmem_cap = int(v)
                break
        for attr in ("num_cores", "core_count", "num_tensorcores"):
            c = getattr(info, attr, None)
            if c:
                n_cores = int(c)
                break
    except Exception:
        pass
    if n_cores <= 1:
        try:
            kind = jax.devices()[0].device_kind.lower()
            # megacore / multi-TC chips
            if ("v4" in kind) or ("v5p" in kind) or ("v7" in kind) or ("7x" in kind):
                n_cores = 2
        except Exception:
            pass
    _HW_INFO = (vmem_cap, n_cores)
    return _HW_INFO


_BUFFERED_OK = None


def _buffered_supported():
    """Explicit one-time capability probe: does this jax build support
    BlockSpec(pipeline_mode=pl.Buffered(1)) end-to-end (lowering + run)?
    A tiny eager probe kernel avoids the previous broad try/except around the
    real call (which could mask unrelated errors / never fire under jit)."""
    global _BUFFERED_OK
    if _BUFFERED_OK is not None:
        return _BUFFERED_OK
    if not hasattr(pl, "Buffered"):
        _BUFFERED_OK = False
        return _BUFFERED_OK

    def _probe(x_ref, o_ref):
        o_ref[...] = x_ref[...] + 1.0

    try:
        out = pl.pallas_call(
            _probe,
            out_shape=jax.ShapeDtypeStruct((8, 128), jnp.float32),
            grid=(1,),
            in_specs=[pl.BlockSpec((8, 128), lambda i: (0, 0),
                                   pipeline_mode=pl.Buffered(1))],
            out_specs=pl.BlockSpec((8, 128), lambda i: (0, 0)),
        )(jnp.zeros((8, 128), jnp.float32))
        jax.block_until_ready(out)
        _BUFFERED_OK = True
    except Exception:
        _BUFFERED_OK = False
    return _BUFFERED_OK


# ----------------------------------------------------------------------------
# kernel
# ----------------------------------------------------------------------------
def _mlp_kernel(d_in, n_hidden_minus_1, use_vpu_input, tanh_dtype,
                x_ref, w_in_ref, b_in_ref, *rest):
    """One batch tile of the full MLP.  All weights are VMEM-resident."""
    if n_hidden_minus_1 > 0:
        hw_ref, hb_ref, w_out_ref, b_out_ref, o_ref = rest
    else:
        hw_ref = hb_ref = None
        w_out_ref, b_out_ref, o_ref = rest

    x = x_ref[...]
    if use_vpu_input:
        # K = d_in is tiny (<=4): a couple of broadcast mul/adds on the VPU
        # beat a K=2 MXU pass (which still pays full push/pop latency) and
        # free the MXU/vex slot in the single-grid-step small-batch regime.
        w_in = w_in_ref[...].astype(jnp.float32)
        acc = x[:, 0:1] * w_in[0:1, :]
        for k in range(1, d_in):
            acc = acc + x[:, k:k + 1] * w_in[k:k + 1, :]
        pre = acc + b_in_ref[...]
    else:
        pre = (jnp.dot(x.astype(w_in_ref.dtype), w_in_ref[...],
                       preferred_element_type=jnp.float32)
               + b_in_ref[...])
    h = jnp.tanh(pre.astype(tanh_dtype))

    # Hidden layers + tanh (statically unrolled; weights stacked on axis 0).
    for i in range(n_hidden_minus_1):
        pre = (jnp.dot(h.astype(hw_ref.dtype), hw_ref[i],
                       preferred_element_type=jnp.float32)
               + hb_ref[i])
        h = jnp.tanh(pre.astype(tanh_dtype))

    # Output layer (no activation).
    o_ref[...] = (jnp.dot(h.astype(w_out_ref.dtype), w_out_ref[...],
                          preferred_element_type=jnp.float32)
                  + b_out_ref[...])


# ----------------------------------------------------------------------------
# wrapper
# ----------------------------------------------------------------------------
def prepare_params(params, *, weight_dtype=jnp.float32):
    """One-time weight preparation: dtype casts, 128-lane padded copy of the
    (small) output layer, and static metadata.  Do this once at init time so
    the forward path never re-reads/re-writes weight bytes in HBM."""
    w_in = jnp.asarray(params["w_in"], jnp.float32)
    b_in = jnp.asarray(params["b_in"], jnp.float32).reshape(1, -1)
    hw = jnp.asarray(params["hw"], jnp.float32)
    hb = jnp.asarray(params["hb"], jnp.float32)
    w_out = jnp.asarray(params["w_out"], jnp.float32)
    b_out = jnp.asarray(params["b_out"], jnp.float32).reshape(1, -1)

    d_in, neurons = w_in.shape
    d_out = w_out.shape[1]
    n_hm1 = int(hw.shape[0])
    wdt = jnp.dtype(weight_dtype)

    d_out_pad = _round_up(d_out, 128)
    if d_out_pad != d_out:
        w_out_p = jnp.pad(w_out, ((0, 0), (0, d_out_pad - d_out)))
        b_out_p = jnp.pad(b_out, ((0, 0), (0, d_out_pad - d_out)))
    else:
        w_out_p, b_out_p = w_out, b_out

    return dict(
        _prepped=True,
        d_in=int(d_in), neurons=int(neurons), d_out=int(d_out),
        d_out_pad=int(d_out_pad), n_hidden_minus_1=n_hm1, weight_dtype=wdt,
        w_in=w_in.astype(wdt), b_in=b_in,
        hw=hw.astype(wdt) if n_hm1 > 0 else None,
        hb=hb if n_hm1 > 0 else None,
        w_out=w_out.astype(wdt), b_out=b_out,
        w_out_pad=w_out_p.astype(wdt), b_out_pad=b_out_p,
    )


def neural_net_forward(x, params, *, tile_b=None, weight_dtype=jnp.float32,
                       tanh_dtype=jnp.float32):
    """x: [B, input_dim].  params: dict from init_params (raw) or
    prepare_params (prepped).  Returns [B, d_out] float32.

    tanh_dtype=jnp.bfloat16 roughly doubles EUP throughput on v6e/v7x when
    tanh (not the MXU) is the binding unit; keep float32 on v5e / for parity.
    """
    if not (isinstance(params, dict) and params.get("_prepped")):
        params = prepare_params(params, weight_dtype=weight_dtype)

    d_in = params["d_in"]
    neurons = params["neurons"]
    d_out = params["d_out"]
    d_out_pad = params["d_out_pad"]
    n_hm1 = params["n_hidden_minus_1"]
    w_itemsize = params["weight_dtype"].itemsize

    x = jnp.asarray(x, jnp.float32)
    B = x.shape[0]
    assert x.shape[1] == d_in

    vmem_cap, n_cores = _tpu_hw_info()
    buffered = _buffered_supported()
    vmem_budget = int(0.85 * vmem_cap)          # never over-request scoped VMEM

    # ---- output layout: dense 128-lane padded store while the padded
    #      writeback is small; direct [B_pad, d_out] store at large batch so a
    #      d_out=1 output does not blow up HBM writeback by ~128x.
    b_pad_est = _round_up(B, 8)
    use_padded_out = (d_out != d_out_pad) and (b_pad_est * d_out_pad * 4 <= (4 << 20))
    if use_padded_out:
        d_out_eff = d_out_pad
        w_out_k, b_out_k = params["w_out_pad"], params["b_out_pad"]
    else:
        d_out_eff = d_out
        w_out_k, b_out_k = params["w_out"], params["b_out"]

    # ---- VMEM footprint of resident weights (single-buffered when Buffered(1)
    #      is available; otherwise the pipeliner double-buffers them).
    n_buf = 1 if buffered else 2
    hw_size = params["hw"].size if n_hm1 > 0 else 0
    hb_size = params["hb"].size if n_hm1 > 0 else 0
    weight_bytes = n_buf * (
        (params["w_in"].size + hw_size + w_out_k.size) * w_itemsize
        + (params["b_in"].size + hb_size + b_out_k.size) * 4)

    # ---- batch tiling: one grid step per TensorCore (1 on v5e/v6e, n_cores on
    #      megacore chips), then capped so x/out tiles + live activations fit.
    if tile_b is None:
        n_steps = n_cores if (n_cores > 1 and B >= 64) else 1
        tile_b = _round_up(max(1, (B + n_steps - 1) // n_steps), 8)
    else:
        tile_b = _round_up(int(tile_b), 8)
    per_row_bytes = 4 * (3 * neurons + 2 * d_in + 2 * d_out_eff)
    avail = vmem_budget - weight_bytes - (4 << 20)
    tile_b_max = max(8, (avail // max(per_row_bytes, 1)) // 8 * 8)
    tile_b = int(min(tile_b, tile_b_max))
    B_pad = _round_up(B, tile_b)
    if B_pad != B:
        x = jnp.pad(x, ((0, B_pad - B), (0, 0)))

    act_bytes = 3 * tile_b * neurons * 4                    # live h + temps
    io_bytes = 2 * tile_b * (d_in + d_out_eff) * 4          # double-buffered x/out
    vmem_limit = int(min(vmem_budget,
                         max(16 << 20,
                             weight_bytes + act_bytes + io_bytes + (4 << 20))))

    const = dict(pipeline_mode=pl.Buffered(1)) if buffered else {}
    use_vpu_input = d_in <= 4
    kernel = functools.partial(_mlp_kernel, d_in, n_hm1, use_vpu_input,
                               jnp.dtype(tanh_dtype))

    in_specs = [
        pl.BlockSpec((tile_b, d_in), lambda i: (i, 0)),
        pl.BlockSpec((d_in, neurons), lambda i: (0, 0), **const),
        pl.BlockSpec((1, neurons), lambda i: (0, 0), **const),
    ]
    args = [x, params["w_in"], params["b_in"]]
    if n_hm1 > 0:
        in_specs += [
            pl.BlockSpec((n_hm1, neurons, neurons), lambda i: (0, 0, 0), **const),
            pl.BlockSpec((n_hm1, 1, neurons), lambda i: (0, 0, 0), **const),
        ]
        args += [params["hw"], params["hb"]]
    in_specs += [
        pl.BlockSpec((neurons, d_out_eff), lambda i: (0, 0), **const),
        pl.BlockSpec((1, d_out_eff), lambda i: (0, 0), **const),
    ]
    args += [w_out_k, b_out_k]

    out = pl.pallas_call(
        kernel,
        out_shape=jax.ShapeDtypeStruct((B_pad, d_out_eff), jnp.float32),
        grid=(B_pad // tile_b,),
        in_specs=in_specs,
        out_specs=pl.BlockSpec((tile_b, d_out_eff), lambda i: (i, 0)),
        compiler_params=pltpu.CompilerParams(
            dimension_semantics=("parallel",),
            vmem_limit_bytes=vmem_limit),
    )(*args)

    return out[:B, :d_out]


# ----------------------------------------------------------------------------
# init + reference
# ----------------------------------------------------------------------------
def init_params(key, input_dim, output_dim, n_hidden_layers, neurons):
    """Xavier-uniform init with tanh gain (5/3); biases zero.  Weights are
    stored transposed ([in, out]) relative to torch.nn.Linear."""
    gain = 5.0 / 3.0

    def xavier(k, fan_in, fan_out):
        bound = gain * (6.0 / (fan_in + fan_out)) ** 0.5
        # PyTorch weight shape is (out, in); sample then transpose to (in, out)
        w = jax.random.uniform(k, (fan_out, fan_in), jnp.float32,
                               minval=-bound, maxval=bound)
        return w.T

    keys = jax.random.split(key, n_hidden_layers + 1)
    w_in = xavier(keys[0], input_dim, neurons)
    b_in = jnp.zeros((1, neurons), jnp.float32)

    if n_hidden_layers >= 2:
        hw = jnp.stack([xavier(keys[1 + i], neurons, neurons)
                        for i in range(n_hidden_layers - 1)], axis=0)
        hb = jnp.zeros((n_hidden_layers - 1, 1, neurons), jnp.float32)
    else:  # no hidden-to-hidden layers
        hw = jnp.zeros((0, neurons, neurons), jnp.float32)
        hb = jnp.zeros((0, 1, neurons), jnp.float32)

    w_out = xavier(keys[n_hidden_layers], neurons, output_dim)
    b_out = jnp.zeros((1, output_dim), jnp.float32)

    return dict(w_in=w_in, b_in=b_in, hw=hw, hb=hb, w_out=w_out, b_out=b_out)


def _reference(x, p):
    h = jnp.tanh(x.astype(jnp.float32) @ p["w_in"] + p["b_in"])
    for i in range(p["hw"].shape[0]):
        h = jnp.tanh(h @ p["hw"][i] + p["hb"][i])
    return h @ p["w_out"] + p["b_out"]


if __name__ == "__main__":
    # Small shapes consistent with the module's forward.
    input_dimension = 2
    output_dimension = 1
    n_hidden_layers = 3
    neurons = 32
    batch = 16

    key = jax.random.PRNGKey(0)
    k_x, k_p = jax.random.split(key)

    x = jax.random.normal(k_x, (batch, input_dimension), jnp.float32)
    params = init_params(k_p, input_dimension, output_dimension,
                         n_hidden_layers, neurons)
    prepped = prepare_params(params)          # one-time weight prep

    out = jax.block_until_ready(neural_net_forward(x, prepped))
    ref = _reference(x, params)
    assert out.shape == (batch, output_dimension)
    assert jnp.allclose(out, ref, atol=1e-5, rtol=1e-5)

    # Secondary check: non-multiple batch (padding path) + single-layer MLP
    # (no hidden-weight stack in the kernel signature).
    x2 = jax.random.normal(k_x, (13, input_dimension), jnp.float32)
    params2 = init_params(k_p, input_dimension, output_dimension, 1, neurons)
    out2 = jax.block_until_ready(neural_net_forward(x2, prepare_params(params2)))
    ref2 = _reference(x2, params2)
    assert out2.shape == (13, output_dimension)
    assert jnp.allclose(out2, ref2, atol=1e-5, rtol=1e-5)

    # Third check: large-batch path (direct [B, d_out] store, no 128-lane
    # output padding; multi-step grid on megacore chips).
    x3 = jax.random.normal(k_x, (8201, input_dimension), jnp.float32)
    out3 = jax.block_until_ready(neural_net_forward(x3, prepped))
    ref3 = _reference(x3, params)
    assert out3.shape == (8201, output_dimension)
    assert jnp.allclose(out3, ref3, atol=1e-5, rtol=1e-5)

    print("KERNEL_OK")
</pallas_src>

<mosaic_0001>
module attributes {stable_mosaic.version = 11 : i64} {
  func.func @_probe(%arg0: i32, %arg1: memref<8x128xf32, #tpu.memory_space<vmem>>, %arg2: memref<8x128xf32, #tpu.memory_space<vmem>>) attributes {dimension_semantics = [#tpu.dimension_semantics<arbitrary>], iteration_bounds = array<i64: 1>, scalar_prefetch = 0 : i64, scratch_operands = 0 : i64, tpu.core_type = #tpu.core_type<tc>, window_params = [{pipeline_mode = #tpu.pipeline_mode<synchronous>, transform_indices = @transform_0, window_bounds = array<i64: 8, 128>}, {pipeline_mode = #tpu.pipeline_mode<synchronous>, transform_indices = @transform_1, window_bounds = array<i64: 8, 128>}]} {
    %c0 = arith.constant 0 : index
    %c0_0 = arith.constant 0 : index
    %0 = vector.load %arg1[%c0, %c0_0] : memref<8x128xf32, #tpu.memory_space<vmem>>, vector<8x128xf32>
    %cst = arith.constant 1.000000e+00 : f32
    %1 = vector.broadcast %cst : f32 to vector<8x128xf32>
    %2 = arith.addf %0, %1 : vector<8x128xf32>
    %c0_1 = arith.constant 0 : index
    %c0_2 = arith.constant 0 : index
    %3 = vector.load %arg2[%c0_1, %c0_2] : memref<8x128xf32, #tpu.memory_space<vmem>>, vector<8x128xf32>
    tpu.vector_store %arg2[%c0_1, %c0_2], %2 {strides = array<i32>} : memref<8x128xf32, #tpu.memory_space<vmem>>, vector<8x128xf32>,
    return
  }
  func.func @transform_0(%arg0: i32) -> (i32, i32) {
    %c0_i32 = arith.constant 0 : i32
    %c0_i32_0 = arith.constant 0 : i32
    %c0_i32_1 = arith.constant 0 : i32
    return %c0_i32, %c0_i32_0 : i32, i32
  }
  func.func @transform_1(%arg0: i32) -> (i32, i32) {
    %c0_i32 = arith.constant 0 : i32
    %c0_i32_0 = arith.constant 0 : i32
    %c0_i32_1 = arith.constant 0 : i32
    return %c0_i32, %c0_i32_0 : i32, i32
  }
}

module attributes {stable_mosaic.version = 11 : i64} {
  func.func @_mlp_kernel(%arg0: i32, %arg1: memref<16x2xf32, #tpu.memory_space<vmem>>, %arg2: memref<2x32xf32, #tpu.memory_space<vmem>>, %arg3: memref<1x32xf32, #tpu.memory_space<vmem>>, %arg4: memref<2x32x32xf32, #tpu.memory_space<vmem>>, %arg5: memref<2x1x32xf32, #tpu.memory_space<vmem>>, %arg6: memref<32x128xf32, #tpu.memory_space<vmem>>, %arg7: memref<1x128xf32, #tpu.memory_space<vmem>>, %arg8: memref<16x128xf32, #tpu.memory_space<vmem>>) attributes {dimension_semantics = [#tpu.dimension_semantics<parallel>], iteration_bounds = array<i64: 1>, scalar_prefetch = 0 : i64, scratch_operands = 0 : i64, tpu.core_type = #tpu.core_type<tc>, window_params = [{transform_indices = @transform_0, window_bounds = array<i64: 16, 2>}, {pipeline_mode = #tpu.pipeline_mode<synchronous>, transform_indices = @transform_1, window_bounds = array<i64: 2, 32>}, {pipeline_mode = #tpu.pipeline_mode<synchronous>, transform_indices = @transform_2, window_bounds = array<i64: 1, 32>}, {pipeline_mode = #tpu.pipeline_mode<synchronous>, transform_indices = @transform_3, window_bounds = array<i64: 2, 32, 32>}, {pipeline_mode = #tpu.pipeline_mode<synchronous>, transform_indices = @transform_4, window_bounds = array<i64: 2, 1, 32>}, {pipeline_mode = #tpu.pipeline_mode<synchronous>, transform_indices = @transform_5, window_bounds = array<i64: 32, 128>}, {pipeline_mode = #tpu.pipeline_mode<synchronous>, transform_indices = @transform_6, window_bounds = array<i64: 1, 128>}, {transform_indices = @transform_7, window_bounds = array<i64: 16, 128>}]} {
    %c0 = arith.constant 0 : index
    %c0_0 = arith.constant 0 : index
    %0 = vector.load %arg1[%c0, %c0_0] : memref<16x2xf32, #tpu.memory_space<vmem>>, vector<16x2xf32>
    %c0_1 = arith.constant 0 : index
    %c0_2 = arith.constant 0 : index
    %1 = vector.load %arg2[%c0_1, %c0_2] : memref<2x32xf32, #tpu.memory_space<vmem>>, vector<2x32xf32>
    %2 = vector.extract_strided_slice %0 {offsets = [0, 0], sizes = [16, 1], strides = [1, 1]} : vector<16x2xf32> to vector<16x1xf32>
    %3 = vector.extract_strided_slice %1 {offsets = [0, 0], sizes = [1, 32], strides = [1, 1]} : vector<2x32xf32> to vector<1x32xf32>
    %4 = vector.broadcast %2 : vector<16x1xf32> to vector<16x32xf32>
    %5 = vector.broadcast %3 : vector<1x32xf32> to vector<16x32xf32>
    %6 = arith.mulf %4, %5 : vector<16x32xf32>
    %7 = vector.extract_strided_slice %0 {offsets = [0, 1], sizes = [16, 1], strides = [1, 1]} : vector<16x2xf32> to vector<16x1xf32>
    %8 = vector.extract_strided_slice %1 {offsets = [1, 0], sizes = [1, 32], strides = [1, 1]} : vector<2x32xf32> to vector<1x32xf32>
    %9 = vector.broadcast %7 : vector<16x1xf32> to vector<16x32xf32>
    %10 = vector.broadcast %8 : vector<1x32xf32> to vector<16x32xf32>
    %11 = arith.mulf %9, %10 : vector<16x32xf32>
    %12 = arith.addf %6, %11 : vector<16x32xf32>
    %c0_3 = arith.constant 0 : index
    %c0_4 = arith.constant 0 : index
    %13 = vector.load %arg3[%c0_3, %c0_4] : memref<1x32xf32, #tpu.memory_space<vmem>>, vector<1x32xf32>
    %14 = vector.broadcast %13 : vector<1x32xf32> to vector<16x32xf32>
    %15 = arith.addf %12, %14 : vector<16x32xf32>
    %16 = math.tanh %15 : vector<16x32xf32>
    %c0_5 = arith.constant 0 : index
    %c0_6 = arith.constant 0 : index
    %c0_7 = arith.constant 0 : index
    %17 = vector.load %arg4[%c0_5, %c0_6, %c0_7] : memref<2x32x32xf32, #tpu.memory_space<vmem>>, vector<1x32x32xf32>
    %18 = vector.shape_cast %17 : vector<1x32x32xf32> to vector<32x32xf32>
    %cst = arith.constant dense<0.000000e+00> : vector<16x32xf32>
    %19 = tpu.matmul %16, %18, %cst {dimension_numbers = #tpu.dot_dimension_numbers<[1], [0], [0], [1], [0, 0, 1, 1], [], []>} : vector<16x32xf32>, vector<32x32xf32>, vector<16x32xf32> -> vector<16x32xf32>
    %c0_8 = arith.constant 0 : index
    %c0_9 = arith.constant 0 : index
    %c0_10 = arith.constant 0 : index
    %20 = vector.load %arg5[%c0_8, %c0_9, %c0_10] : memref<2x1x32xf32, #tpu.memory_space<vmem>>, vector<1x1x32xf32>
    %21 = vector.shape_cast %20 : vector<1x1x32xf32> to vector<1x32xf32>
    %22 = vector.broadcast %21 : vector<1x32xf32> to vector<16x32xf32>
    %23 = arith.addf %19, %22 : vector<16x32xf32>
    %24 = math.tanh %23 : vector<16x32xf32>
    %c1 = arith.constant 1 : index
    %c0_11 = arith.constant 0 : index
    %c0_12 = arith.constant 0 : index
    %25 = vector.load %arg4[%c1, %c0_11, %c0_12] : memref<2x32x32xf32, #tpu.memory_space<vmem>>, vector<1x32x32xf32>
    %26 = vector.shape_cast %25 : vector<1x32x32xf32> to vector<32x32xf32>
    %cst_13 = arith.constant dense<0.000000e+00> : vector<16x32xf32>
    %27 = tpu.matmul %24, %26, %cst_13 {dimension_numbers = #tpu.dot_dimension_numbers<[1], [0], [0], [1], [0, 0, 1, 1], [], []>} : vector<16x32xf32>, vector<32x32xf32>, vector<16x32xf32> -> vector<16x32xf32>
    %c1_14 = arith.constant 1 : index
    %c0_15 = arith.constant 0 : index
    %c0_16 = arith.constant 0 : index
    %28 = vector.load %arg5[%c1_14, %c0_15, %c0_16] : memref<2x1x32xf32, #tpu.memory_space<vmem>>, vector<1x1x32xf32>
    %29 = vector.shape_cast %28 : vector<1x1x32xf32> to vector<1x32xf32>
    %30 = vector.broadcast %29 : vector<1x32xf32> to vector<16x32xf32>
    %31 = arith.addf %27, %30 : vector<16x32xf32>
    %32 = math.tanh %31 : vector<16x32xf32>
    %c0_17 = arith.constant 0 : index
    %c0_18 = arith.constant 0 : index
    %33 = vector.load %arg6[%c0_17, %c0_18] : memref<32x128xf32, #tpu.memory_space<vmem>>, vector<32x128xf32>
    %cst_19 = arith.constant dense<0.000000e+00> : vector<16x128xf32>
    %34 = tpu.matmul %32, %33, %cst_19 {dimension_numbers = #tpu.dot_dimension_numbers<[1], [0], [0], [1], [0, 0, 1, 1], [], []>} : vector<16x32xf32>, vector<32x128xf32>, vector<16x128xf32> -> vector<16x128xf32>
    %c0_20 = arith.constant 0 : index
    %c0_21 = arith.constant 0 : index
    %35 = vector.load %arg7[%c0_20, %c0_21] : memref<1x128xf32, #tpu.memory_space<vmem>>, vector<1x128xf32>
    %36 = vector.broadcast %35 : vector<1x128xf32> to vector<16x128xf32>
    %37 = arith.addf %34, %36 : vector<16x128xf32>
    %c0_22 = arith.constant 0 : index
    %c0_23 = arith.constant 0 : index
    %38 = vector.load %arg8[%c0_22, %c0_23] : memref<16x128xf32, #tpu.memory_space<vmem>>, vector<16x128xf32>
    tpu.vector_store %arg8[%c0_22, %c0_23], %37 {strides = array<i32>} : memref<16x128xf32, #tpu.memory_space<vmem>>, vector<16x128xf32>,
    return
  }
  func.func @transform_0(%arg0: i32) -> (i32, i32) {
    %c0_i32 = arith.constant 0 : i32
    %c0_i32_0 = arith.constant 0 : i32
    return %arg0, %c0_i32 : i32, i32
  }
  func.func @transform_1(%arg0: i32) -> (i32, i32) {
    %c0_i32 = arith.constant 0 : i32
    %c0_i32_0 = arith.constant 0 : i32
    %c0_i32_1 = arith.constant 0 : i32
    return %c0_i32, %c0_i32_0 : i32, i32
  }
  func.func @transform_2(%arg0: i32) -> (i32, i32) {
    %c0_i32 = arith.constant 0 : i32
    %c0_i32_0 = arith.constant 0 : i32
    %c0_i32_1 = arith.constant 0 : i32
    return %c0_i32, %c0_i32_0 : i32, i32
  }
  func.func @transform_3(%arg0: i32) -> (i32, i32, i32) {
    %c0_i32 = arith.constant 0 : i32
    %c0_i32_0 = arith.constant 0 : i32
    %c0_i32_1 = arith.constant 0 : i32
    %c0_i32_2 = arith.constant 0 : i32
    return %c0_i32, %c0_i32_0, %c0_i32_1 : i32, i32, i32
  }
  func.func @transform_4(%arg0: i32) -> (i32, i32, i32) {
    %c0_i32 = arith.constant 0 : i32
    %c0_i32_0 = arith.constant 0 : i32
    %c0_i32_1 = arith.constant 0 : i32
    %c0_i32_2 = arith.constant 0 : i32
    return %c0_i32, %c0_i32_0, %c0_i32_1 : i32, i32, i32
  }
  func.func @transform_5(%arg0: i32) -> (i32, i32) {
    %c0_i32 = arith.constant 0 : i32
    %c0_i32_0 = arith.constant 0 : i32
    %c0_i32_1 = arith.constant 0 : i32
    return %c0_i32, %c0_i32_0 : i32, i32
  }
  func.func @transform_6(%arg0: i32) -> (i32, i32) {
    %c0_i32 = arith.constant 0 : i32
    %c0_i32_0 = arith.constant 0 : i32
    %c0_i32_1 = arith.constant 0 : i32
    return %c0_i32, %c0_i32_0 : i32, i32
  }
  func.func @transform_7(%arg0: i32) -> (i32, i32) {
    %c0_i32 = arith.constant 0 : i32
    %c0_i32_0 = arith.constant 0 : i32
    return %arg0, %c0_i32 : i32, i32
  }
}

</mosaic_0001>

<bundles_post_ra>
// kernel: tpu_custom_call.1
= control target key start
LH: loop header
LB: loop body
LE: loop exit
PB: predicated region body
PF: predicated region fallthrough
CT: control target
= control target key end

     0   :  { %6 = vsyncpa [#allocation3], 0  ;;  %s115_s0 = inlined_call_operand.hbm [shape: f32[8,128], index: 0, kind: input, shape index: {}]   ;;  %s116_s1 = inlined_call_operand.hbm [shape: f32[8,128], index: 1, kind: output, shape index: {}]  }
   0x1   :  { %7 = vsyncpa [#allocation4], 0  ;;  %s13_s8 = sshll.u32 %s115_s0, 4  ;;  %s97_s9 = smov [#allocation2]   ;;  %s14_s8 = int_to_ptr.hbm [resolvable:$true] %s13_s8 }
   0x2   :  { %s15_s10 = sshll.u32 %s97_s9, 4  ;;  %s16_s10 = int_to_ptr.vmem [resolvable:$true] %s15_s10 }
   0x3   :  { %18 = dma.hbm_to_vmem [thread:$0]  %s14_s8, 128, %s16_s10, [#allocation3]  }
   0x4   :  { %93 = dma.done.wait [#allocation3], 128  }
   0x5   :  { %94 = vsyncadd [#allocation3], 4294967168  ;;  %s98_s11 = smov [#allocation5]   ;;  %s33_s15 = sshll.u32 %s116_s1, 4  ;;  %v23_v0 = vld [vmem:[#allocation2] sm:$0xff]  ;;  %s34_s15 = int_to_ptr.hbm [resolvable:$true] %s33_s15 }
   0x6   :  { %s31_s12 = sshll.u32 %s98_s11, 4  ;;  %v24_v1 = vadd.f32 1.0, %v23_v0  ;;  %s32_s12 = int_to_ptr.vmem [resolvable:$true] %s31_s12 }
   0x8   :  { %25 = vst [vmem:[#allocation5] sm:$0xff] %v24_v1 }
   0x9   :  { %36 = dma.vmem_to_hbm [thread:$0]  %s32_s12, 128, %s34_s15, [#allocation4]  }
   0xa   :  { %95 = dma.done.wait [#allocation4], 128  }
   0xb   :  { %96 = vsyncadd [#allocation4], 4294967168 }
   0xc   :  { %41 = vsyncpa [#allocation3], 1 }
   0xd   :  { %42 = vsyncpa [#allocation4], 1 }

// kernel: tpu_custom_call.1
= control target key start
LH: loop header
LB: loop body
LE: loop exit
PB: predicated region body
PF: predicated region fallthrough
CT: control target
= control target key end

     0   :  { %12 = vsyncpa [#allocation3], 0  ;;  %s444_s0 = inlined_call_operand.vmem [shape: f32[16,2], index: 0, kind: input, shape index: {}]   ;;  %s445_s1 = inlined_call_operand.vmem [shape: f32[2,32], index: 1, kind: input, shape index: {}]   ;;  %s446_s2 = inlined_call_operand.vmem [shape: f32[1,32], index: 2, kind: input, shape index: {}]   ;;  %s447_s3 = inlined_call_operand.hbm [shape: f32[2,32,32], index: 3, kind: input, shape index: {}]   ;;  %s448_s4 = inlined_call_operand.vmem [shape: f32[2,1,32], index: 4, kind: input, shape index: {}]   ;;  %s449_s5 = inlined_call_operand.hbm [shape: f32[32,128], index: 5, kind: input, shape index: {}]   ;;  %s450_s6 = inlined_call_operand.vmem [shape: f32[1,128], index: 6, kind: input, shape index: {}]   ;;  %s451_s7 = inlined_call_operand.hbm [shape: f32[16,128], index: 7, kind: output, shape index: {}]  }
   0x1   :  { %13 = vsyncpa [#allocation6], 0 }
   0x2   :  { %14 = vsyncpa [#allocation4], 0  ;;  %s25_s26 = sshll.u32 %s447_s3, 4  ;;  %s352_s27 = smov [#allocation2]   ;;  %s26_s26 = int_to_ptr.hbm [resolvable:$true] %s25_s26 }
   0x3   :  { %s27_s28 = sshll.u32 %s352_s27, 4  ;;  %s40_s8 = sshll.u32 %s449_s5, 4  ;;  %s28_s28 = int_to_ptr.vmem [resolvable:$true] %s27_s28  ;;  %s41_s8 = int_to_ptr.hbm [resolvable:$true] %s40_s8 }
   0x4   :  { %s353_s9 = smov 128   ;;  %s354_s10 = smov 8  }
   0x5   :  { %33 = dma.hbm_to_vmem [thread:$0]  %s26_s26, 1024, %s28_s28, [#allocation3], %s353_s9, %s353_s9, %s354_s10  }
   0x6   :  { %s355_s11 = smov [#allocation5]  }
   0x7   :  { %s42_s12 = sshll.u32 %s355_s11, 4  ;;  %s43_s12 = int_to_ptr.vmem [resolvable:$true] %s42_s12 }
   0x8   :  { %48 = dma.hbm_to_vmem [thread:$0]  %s41_s8, 512, %s43_s12, [#allocation6], %s353_s9, %s353_s9, %s354_s10  }
   0x9   :  { %346 = dma.done.wait [#allocation3], 1024  }
   0xa   :  { %347 = vsyncadd [#allocation3], 4294966272 }
   0xb   :  { %348 = dma.done.wait [#allocation6], 512  }
   0xc   :  { %349 = vsyncadd [#allocation6], 4294966784  ;;  %v356_v0 = vmov 0   ;;  %v60_v1 = vld [vmem:[%s444_s0 + $0x8] sm:$0xff]  ;;  %v59_v2 = vld [vmem:[%s444_s0] sm:$0xff]  ;;  %v357_v3 = vmov 1  }
   0xd   :  { %256 = vset.pattern.permute.xlu1 %v356_v0  ;;  %254 = vset.pattern.permute.xlu0 %v356_v0  ;;  %v99_v4 = vld [vmem:[#allocation2 + $0x18] sm:$0xff]  ;;  %v98_v5 = vld [vmem:[#allocation2 + $0x10] sm:$0xff]  ;;  %v97_v6 = vld [vmem:[#allocation2 + $0x8] sm:$0xff]  ;;  %vm104_vm0 = vcmask 261120   ;;  %s222_s25 = sshll.u32 %s451_s7, 4  ;;  %s223_s25 = int_to_ptr.hbm [resolvable:$true] %s222_s25 }
   0xe   :  { %69 = vperm.xlu1 %256, %v60_v1   ;;  %64 = vperm.xlu0 %254, %v59_v2   ;;  %v96_v7 = vld [vmem:[#allocation2] sm:$0xff]  ;;  %v140_v26 = vld [vmem:[#allocation2 + $0x38] sm:$0xff]  ;;  %v139_v27 = vld [vmem:[#allocation2 + $0x30] sm:$0xff] }
   0xf   :  { %123 = vmatpush.msra.mxu0 %v99_v4  ;;  %243 = vmatpush.msra.mxu3 %v99_v4  ;;  %v61_v10 = vld [vmem:[%s445_s1] sm:$0x3]  ;;  %v138_v28 = vld [vmem:[#allocation2 + $0x28] sm:$0xff]  ;;  %v180_v37 = vld [vmem:[#allocation5 + $0x18] sm:$0xff] }
  0x10   :  { %v72_v11 = vperm.slane %v61_v10, 0  ;;  %v83_v12 = vperm.slane %v61_v10, 1  ;;  %v258_v17 = vld [vmem:[%s446_s2] ss:$0 sm:$0xff]  ;;  %164 = vmatpush.msra.mxu1 %v140_v26  ;;  %203 = vmatpush.msra.mxu2 %v180_v37  ;;  %v179_v38 = vld [vmem:[#allocation5 + $0x10] sm:$0xff]  ;;  %v178_v39 = vld [vmem:[#allocation5 + $0x8] sm:$0xff] }
  0x11   :  { %124 = vmatpush.msra.mxu0 %v98_v5  ;;  %244 = vmatpush.msra.mxu3 %v98_v5  ;;  %v137_v29 = vld [vmem:[#allocation2 + $0x20] sm:$0xff] }
  0x12   :  { %165 = vmatpush.msra.mxu1 %v139_v27  ;;  %v259_v30 = vld [vmem:[%s448_s4] ss:$0 sm:$0xff]  ;;  %204 = vmatpush.msra.mxu2 %v179_v38  ;;  %v260_v41 = vld [vmem:[%s448_s4 + $0x1] ss:$0 sm:$0xff]  ;;  %s358_s4 = smov [#allocation7]  }
  0x13   :  { %125 = vmatpush.msra.mxu0 %v97_v6  ;;  %245 = vmatpush.msra.mxu3 %v97_v6  ;;  %v177_v40 = vld [vmem:[#allocation5] sm:$0xff]  ;;  %s220_s22 = sshll.u32 %s358_s4, 4  ;;  %s221_s22 = int_to_ptr.vmem [resolvable:$true] %s220_s22 }
  0x14   :  { %166 = vmatpush.msra.mxu1 %v138_v28  ;;  %205 = vmatpush.msra.mxu2 %v178_v39  ;;  %v261_v48 = vld [vmem:[%s450_s6] ss:$0 sm:$0xff] }
  0x15   :  { %126 = vmatpush.msra.mxu0 %v96_v7  ;;  %246 = vmatpush.msra.mxu3 %v96_v7 }
  0x16   :  { %257 = vset.pattern.permute.xlu1 %v357_v3  ;;  %255 = vset.pattern.permute.xlu0 %v357_v3 }
  0x17   :  { %80 = vperm.xlu1 %257, %v60_v1   ;;  %76 = vperm.xlu0 %255, %v59_v2  }
  0x18   :  { %167 = vmatpush.msra.mxu1 %v137_v29  ;;  %206 = vmatpush.msra.mxu2 %v177_v40 }
  0x80   :  { %v65_v8 = vpop.permute.xlu0 %64  ;;  %v70_v9 = vpop.permute.xlu1 %69 }
  0x81   :  { %v73_v15 = vmul.f32 %v72_v11, %v65_v8  ;;  %v74_v16 = vmul.f32 %v72_v11, %v70_v9 }
  0x89   :  { %v81_v13 = vpop.permute.xlu1 %80  ;;  %v77_v14 = vpop.permute.xlu0 %76 }
  0x8a   :  { %v85_v18 = vmul.f32 %v83_v12, %v81_v13  ;;  %v84_v19 = vmul.f32 %v83_v12, %v77_v14 }
  0x8c   :  { %v87_v20 = vadd.f32 %v85_v18, %v74_v16  ;;  %v86_v21 = vadd.f32 %v84_v19, %v73_v15 }
  0x8e   :  { %v93_v22 = vadd.f32 %v258_v17, %v87_v20  ;;  %v92_v23 = vadd.f32 %v258_v17, %v86_v21 }
  0x90   :  { %262 = vtanh.f32 %v93_v22 }
  0x91   :  { %264 = vtanh.f32 %v92_v23 }
  0x96   :  { %v263_v24 = vpop.eup %262 }
  0x97   :  { %v265_v25 = vpop.eup %264  ;;  %237 = vmatmul.msk.f32.vlgmr.msra.gmra.mxu3 %vm104_vm0, %v263_v24 }
  0x98   :  { %236 = vmatmul.msk.f32.vlgmr.msra.gmra.mxu0 %vm104_vm0, %v265_v25 }
 0x115   :  { %v128_v31 = vpop.f32.mrf.mxu0 }
 0x116   :  { %v129_v32 = vadd.f32 %v259_v30, %v128_v31 }
 0x118   :  { %266 = vtanh.f32 %v129_v32 }
 0x11a   :  { %v131_v33 = vpop.f32.mrf.mxu3 }
 0x11b   :  { %v132_v34 = vadd.f32 %v259_v30, %v131_v33 }
 0x11d   :  { %268 = vtanh.f32 %v132_v34 }
 0x11e   :  { %v267_v35 = vpop.eup %266 }
 0x11f   :  { %239 = vmatmul.msk.f32.vlgmr.msra.gmra.mxu1 %vm104_vm0, %v267_v35 }
 0x123   :  { %v269_v36 = vpop.eup %268 }
 0x127   :  { %240 = vmatmul.msk.f32.gmra.mxu1 %vm104_vm0, %v269_v36 }
 0x19c   :  { %v169_v42 = vpop.f32.mrf.mxu1 }
 0x19d   :  { %v170_v43 = vadd.f32 %v260_v41, %v169_v42 }
 0x19f   :  { %270 = vtanh.f32 %v170_v43 }
 0x1a4   :  { %v172_v44 = vpop.f32.mrf.mxu1 }
 0x1a5   :  { %v271_v45 = vpop.eup %270  ;;  %v173_v46 = vadd.f32 %v260_v41, %v172_v44 }
 0x1a6   :  { %241 = vmatmul.msk.f32.vlgmr.msra.gmra.mxu2 %vm104_vm0, %v271_v45 }
 0x1a7   :  { %272 = vtanh.f32 %v173_v46 }
 0x1ad   :  { %v273_v47 = vpop.eup %272 }
 0x1ae   :  { %242 = vmatmul.msk.f32.gmra.mxu2 %vm104_vm0, %v273_v47 }
 0x229   :  { %v208_v49 = vpop.f32.mrf.mxu2 }
 0x22a   :  { %v209_v50 = vadd.f32 %v261_v48, %v208_v49 }
 0x22c   :  { %214 = vst [vmem:[#allocation7] sm:$0xff] %v209_v50 }
 0x231   :  { %v211_v51 = vpop.f32.mrf.mxu2 }
 0x232   :  { %v212_v52 = vadd.f32 %v261_v48, %v211_v51 }
 0x234   :  { %215 = vst [vmem:[#allocation7 + $0x8] sm:$0xff] %v212_v52 }
 0x235   :  { %228 = dma.vmem_to_hbm [thread:$0]  %s221_s22, 256, %s223_s25, [#allocation4], %s353_s9, %s353_s9, %s354_s10  }
 0x236   :  { %350 = dma.done.wait [#allocation4], 256  }
 0x237   :  { %351 = vsyncadd [#allocation4], 4294967040 }
 0x238   :  { %233 = vsyncpa [#allocation3], 1 }
 0x239   :  { %234 = vsyncpa [#allocation6], 1 }
 0x23a   :  { %235 = vsyncpa [#allocation4], 1 }

</bundles_post_ra>
